<compile_context>
chip_gen: v5e
topology: v5e:2x2
jax: 0.10.0
libtpu: 0.0.40
codegen_flags: <defaults>
</compile_context>

<pallas_src>
import jax
import jax.numpy as jnp
import numpy as np
from jax.experimental import pallas as pl
from jax.experimental.pallas import tpu as pltpu


def _adaptive_windows(in_size, out_size):
    """torch.nn.functional.adaptive_avg_pool2d window boundaries (static)."""
    return [
        (int(np.floor(i * in_size / out_size)),
         int(np.ceil((i + 1) * in_size / out_size)))
        for i in range(out_size)
    ]


def _build_pool_matrix(H, W, pool, h_wins, w_wins):
    """Static pooling matrix P (HW, 1 + S_h*S_w).

    Column 0: fc = mean over the top-left pool x pool window.
    Column 1 + a*S_w + b: adaptive-avg-pool cell (a, b), h-major / w-minor,
    matching x.view(B, C, -1).transpose(1, 2) ordering.
    """
    s_w = len(w_wins)
    n_out = 1 + len(h_wins) * s_w
    P = np.zeros((H * W, n_out), dtype=np.float32)
    fc_w = 1.0 / float(pool * pool)
    for i in range(pool):
        for j in range(pool):
            P[i * W + j, 0] = fc_w
    for a, (h0, h1) in enumerate(h_wins):
        for b, (w0, w1) in enumerate(w_wins):
            wgt = 1.0 / float((h1 - h0) * (w1 - w0))
            col = 1 + a * s_w + b
            for i in range(h0, h1):
                for j in range(w0, w1):
                    P[i * W + j, col] = wgt
    return P


def _pick_batch_tile(B, C, HW, itemsize, budget_bytes):
    """Images per grid step: fit double-buffered input blocks in the budget,
    but keep >= 2 grid steps when possible so both v7x TensorCores get work."""
    per_image = C * HW * itemsize
    bt = max(1, budget_bytes // (2 * per_image))
    bt = int(min(bt, B))
    if B >= 2:
        bt = min(bt, max(1, B // 2))
    return bt


def _fc_att_kernel(x_ref, p_ref, o_ref):
    # x_ref: (Bt, C, HW)   p_ref: (HW, N)   o_ref: (Bt, C, N)
    p = p_ref[...]
    bt = x_ref.shape[0]
    for i in range(bt):  # static, small unrolled loop; one MXU matmul per image
        acc = jnp.dot(x_ref[i], p, preferred_element_type=jnp.float32)
        o_ref[i] = acc.astype(o_ref.dtype)


def resnet_fc_att_pallas(x_nchw, *, pool_size, adaptive_size, att_pool_size=1,
                         vmem_input_budget_bytes=20 * 1024 * 1024):
    """Pallas implementation of resnet_fc_att.forward (use_pre_feat path)."""
    # TODO(synk): att_pool_size > 1 (extra avg_pool2d after the adaptive pool)
    # is not composed into the pooling matrix; only the default (=1) is handled.
    assert att_pool_size == 1
    B, C, H, W = x_nchw.shape
    HW = H * W
    # F.avg_pool2d(x, pool_size).view(B, C) requires a 1x1 spatial output
    # (pool_size <= H,W < 2*pool_size with the default stride).
    assert (H - pool_size) // pool_size + 1 == 1
    assert (W - pool_size) // pool_size + 1 == 1

    # Mirrors the module's guard exactly: adaptive pool is skipped whenever
    # adaptive_size equals H or W.
    if adaptive_size != H and adaptive_size != W:
        h_wins = _adaptive_windows(H, adaptive_size)
        w_wins = _adaptive_windows(W, adaptive_size)
    else:
        h_wins = [(i, i + 1) for i in range(H)]
        w_wins = [(i, i + 1) for i in range(W)]
    s_h, s_w = len(h_wins), len(w_wins)
    n_out = 1 + s_h * s_w

    p_np = _build_pool_matrix(H, W, int(pool_size), h_wins, w_wins)

    # Free reshape (contiguous minor dims merge); NO transpose, NO dtype upcast.
    x_flat = x_nchw.reshape(B, C, HW)
    p = jnp.asarray(p_np, dtype=x_flat.dtype)

    itemsize = jnp.dtype(x_flat.dtype).itemsize
    bt = _pick_batch_tile(B, C, HW, itemsize, vmem_input_budget_bytes)
    grid = (pl.cdiv(B, bt),)

    out = pl.pallas_call(
        _fc_att_kernel,
        out_shape=jax.ShapeDtypeStruct((B, C, n_out), x_flat.dtype),
        grid_spec=pltpu.PrefetchScalarGridSpec(
            num_scalar_prefetch=0,
            grid=grid,
            in_specs=[
                pl.BlockSpec((bt, C, HW), lambda b: (b, 0, 0)),
                pl.BlockSpec((HW, n_out), lambda b: (0, 0)),
            ],
            out_specs=pl.BlockSpec((bt, C, n_out), lambda b: (b, 0, 0)),
        ),
        compiler_params=pltpu.CompilerParams(
            dimension_semantics=("parallel",),
            vmem_limit_bytes=32 * 1024 * 1024,
        ),
    )(x_flat, p)

    fc = out[:, :, 0]                        # (B, C)
    att = jnp.swapaxes(out[:, :, 1:], 1, 2)  # (B, S_h*S_w, C): tiny transpose
    return fc, att


def reference(x_nchw, pool_size, adaptive_size):
    """Pure-JAX reference mirroring the PyTorch forward."""
    B, C, H, W = x_nchw.shape
    fc = jnp.mean(x_nchw[:, :, :pool_size, :pool_size], axis=(2, 3))
    if adaptive_size != H and adaptive_size != W:
        hw = _adaptive_windows(H, adaptive_size)
        ww = _adaptive_windows(W, adaptive_size)
    else:
        hw = [(i, i + 1) for i in range(H)]
        ww = [(i, i + 1) for i in range(W)]
    cells = []
    for (h0, h1) in hw:
        for (w0, w1) in ww:
            cells.append(jnp.mean(x_nchw[:, :, h0:h1, w0:w1], axis=(2, 3)))
    att = jnp.stack(cells, axis=1)  # (B, S*S, C)
    return fc, att


if __name__ == "__main__":
    # Small resnet-like feature map (NCHW): pool_size == H == W, adaptive_size == 7.
    B, C, H, W = 2, 128, 14, 14
    pool_size, adaptive_size, att_pool_size = 14, 7, 1

    key = jax.random.PRNGKey(0)
    x = jax.random.normal(key, (B, C, H, W), dtype=jnp.float32)

    fc, att = resnet_fc_att_pallas(
        x, pool_size=pool_size, adaptive_size=adaptive_size,
        att_pool_size=att_pool_size)
    jax.block_until_ready((fc, att))

    fc_ref, att_ref = reference(x, pool_size, adaptive_size)
    np.testing.assert_allclose(np.asarray(fc), np.asarray(fc_ref),
                               rtol=1e-5, atol=1e-5)
    np.testing.assert_allclose(np.asarray(att), np.asarray(att_ref),
                               rtol=1e-5, atol=1e-5)

    assert fc.shape == (B, C)
    assert att.shape == (B, adaptive_size * adaptive_size, C)
    print("KERNEL_OK")
</pallas_src>

<mosaic_0001>
module attributes {stable_mosaic.version = 11 : i64} {
  func.func @_fc_att_kernel(%arg0: i32, %arg1: memref<1x128x196xf32, #tpu.memory_space<vmem>>, %arg2: memref<196x50xf32, #tpu.memory_space<vmem>>, %arg3: memref<1x128x50xf32, #tpu.memory_space<vmem>>) attributes {dimension_semantics = [#tpu.dimension_semantics<parallel>], iteration_bounds = array<i64: 2>, scalar_prefetch = 0 : i64, scratch_operands = 0 : i64, tpu.core_type = #tpu.core_type<tc>, window_params = [{transform_indices = @transform_0, window_bounds = array<i64: 1, 128, 196>}, {pipeline_mode = #tpu.pipeline_mode<synchronous>, transform_indices = @transform_1, window_bounds = array<i64: 196, 50>}, {transform_indices = @transform_2, window_bounds = array<i64: 1, 128, 50>}]} {
    %c0 = arith.constant 0 : index
    %c0_0 = arith.constant 0 : index
    %0 = vector.load %arg2[%c0, %c0_0] : memref<196x50xf32, #tpu.memory_space<vmem>>, vector<196x50xf32>
    %c0_1 = arith.constant 0 : index
    %c0_2 = arith.constant 0 : index
    %c0_3 = arith.constant 0 : index
    %1 = vector.load %arg1[%c0_1, %c0_2, %c0_3] : memref<1x128x196xf32, #tpu.memory_space<vmem>>, vector<1x128x196xf32>
    %2 = vector.shape_cast %1 : vector<1x128x196xf32> to vector<128x196xf32>
    %cst = arith.constant dense<0.000000e+00> : vector<128x50xf32>
    %3 = tpu.matmul %2, %0, %cst {dimension_numbers = #tpu.dot_dimension_numbers<[1], [0], [0], [1], [0, 0, 1, 1], [], []>} : vector<128x196xf32>, vector<196x50xf32>, vector<128x50xf32> -> vector<128x50xf32>
    %c0_4 = arith.constant 0 : index
    %c0_5 = arith.constant 0 : index
    %c0_6 = arith.constant 0 : index
    %4 = vector.load %arg3[%c0_4, %c0_5, %c0_6] : memref<1x128x50xf32, #tpu.memory_space<vmem>>, vector<1x128x50xf32>
    %5 = vector.shape_cast %4 : vector<1x128x50xf32> to vector<128x50xf32>
    %6 = vector.shape_cast %3 : vector<128x50xf32> to vector<1x128x50xf32>
    tpu.vector_store %arg3[%c0_4, %c0_5, %c0_6], %6 {strides = array<i32>} : memref<1x128x50xf32, #tpu.memory_space<vmem>>, vector<1x128x50xf32>,
    return
  }
  func.func @transform_0(%arg0: i32) -> (i32, i32, i32) {
    %c0_i32 = arith.constant 0 : i32
    %c0_i32_0 = arith.constant 0 : i32
    %c0_i32_1 = arith.constant 0 : i32
    return %arg0, %c0_i32, %c0_i32_0 : i32, i32, i32
  }
  func.func @transform_1(%arg0: i32) -> (i32, i32) {
    %c0_i32 = arith.constant 0 : i32
    %c0_i32_0 = arith.constant 0 : i32
    %c0_i32_1 = arith.constant 0 : i32
    return %c0_i32, %c0_i32_0 : i32, i32
  }
  func.func @transform_2(%arg0: i32) -> (i32, i32, i32) {
    %c0_i32 = arith.constant 0 : i32
    %c0_i32_0 = arith.constant 0 : i32
    %c0_i32_1 = arith.constant 0 : i32
    return %arg0, %c0_i32, %c0_i32_0 : i32, i32, i32
  }
}

</mosaic_0001>

<bundles_post_ra>
// kernel: tpu_custom_call.1
= control target key start
LH: loop header
LB: loop body
LE: loop exit
PB: predicated region body
PF: predicated region fallthrough
CT: control target
= control target key end

     0   :  { %s542_s9 = smov 0   ;;  %s722_s0 = inlined_call_operand.vmem [shape: f32[2,128,196], index: 0, kind: input, shape index: {}]   ;;  %s723_s1 = inlined_call_operand.vmem [shape: f32[196,50], index: 1, kind: input, shape index: {}]   ;;  %s724_s2 = inlined_call_operand.vmem [shape: f32[2,128,50], index: 2, kind: output, shape index: {}]  }
   0x1 LB: > { %s456_s10 = sadd.s32 4294967295, %s525_s9   ;;  %p460_p0 = scmp.ge.s32.totalorder %s525_s9, 1  ;;  %s525_s9 = sphi %s542_s9, %s12_s9  }
   0x2   : > { %p112_p1 = scmp.lt.s32.totalorder %s525_s9, 3 }
   0x4   : > { %p113_p2 = pnand %p460_p0, %p112_p1 }
   0x5   : > { %p134_p3 = scmp.lt.s32.totalorder (!%p113_p2), %s456_s10, 1 }
   0x6   : > { %116 = sbr.rel (%p113_p2) target bundleno = 242 (0xf2), region = 28 }
   0xb   : > { %v159_v0 = vld [vmem:[%s723_s1 + $0x78] sm:$0xff]  ;;  %v168_v1 = vld [vmem:[%s723_s1 + $0xc0] sm:$0xf]  ;;  %vm250_vm0 = vcmask 1043456   ;;  %v158_v2 = vld [vmem:[%s723_s1 + $0x70] sm:$0xff]  ;;  %s726_s10 = smov (!%p134_p3, %s456_s10), 1 }
   0xc   : > { %486 = vmatpush.msra.mxu2 %v159_v0  ;;  %465 = vmatpush.msk.msra.mxu1 %vm250_vm0, %v168_v1  ;;  %v167_v3 = vld [vmem:[%s723_s1 + $0xb8] sm:$0xff]  ;;  %v157_v4 = vld [vmem:[%s723_s1 + $0x68] sm:$0xff]  ;;  %v166_v5 = vld [vmem:[%s723_s1 + $0xb0] sm:$0xff]  ;;  %s484_s7 = sshll.u32 %s726_s10, 8  ;;  %vm201_vm1 = vcmask 556032   ;;  %s485_s13 = sshll.u32 %s726_s10, 7 }
   0xd   : > { %254 = vmatpush.msra.mxu0 %v159_v0  ;;  %502 = vmatpush.msk.msra.mxu3 %vm250_vm0, %v168_v1  ;;  %v156_v6 = vld [vmem:[%s723_s1 + $0x60] sm:$0xff]  ;;  %v165_v7 = vld [vmem:[%s723_s1 + $0xa8] sm:$0xff]  ;;  %v155_v8 = vld [vmem:[%s723_s1 + $0x58] sm:$0xff]  ;;  %s604_s20 = scalar_lea.vmem %s722_s0, %s484_s7  ;;  %s685_s16 = scalar_lea.vmem %s724_s2, %s485_s13  ;;  %vm384_vm2 = vcmask 408576  }
   0xe   : > { %487 = vmatpush.msra.mxu2 %v158_v2  ;;  %327 = vmatpush.msra.mxu1 %v167_v3  ;;  %v164_v9 = vld [vmem:[%s723_s1 + $0xa0] sm:$0xff]  ;;  %v154_v10 = vld [vmem:[%s723_s1 + $0x50] sm:$0xff]  ;;  %v163_v11 = vld [vmem:[%s723_s1 + $0x98] sm:$0xff] }
   0xf   : > { %255 = vmatpush.msra.mxu0 %v158_v2  ;;  %503 = vmatpush.msra.mxu3 %v167_v3  ;;  %v153_v12 = vld [vmem:[%s723_s1 + $0x48] sm:$0xff]  ;;  %v162_v13 = vld [vmem:[%s723_s1 + $0x90] sm:$0xff]  ;;  %v152_v14 = vld [vmem:[%s723_s1 + $0x40] sm:$0xff] }
  0x10   : > { %488 = vmatpush.msra.mxu2 %v157_v4  ;;  %328 = vmatpush.msra.mxu1 %v166_v5  ;;  %v161_v15 = vld [vmem:[%s723_s1 + $0x88] sm:$0xff]  ;;  %v151_v16 = vld [vmem:[%s723_s1 + $0x38] sm:$0xff]  ;;  %v160_v17 = vld [vmem:[%s723_s1 + $0x80] sm:$0xff] }
  0x11   : > { %256 = vmatpush.msra.mxu0 %v157_v4  ;;  %504 = vmatpush.msra.mxu3 %v166_v5  ;;  %v170_v18 = vld [vmem:[%s604_s20 + $0x8] sm:$0xff]  ;;  %v150_v19 = vld [vmem:[%s723_s1 + $0x30] sm:$0xff]  ;;  %v188_v20 = vld [vmem:[%s604_s20 + $0x98] sm:$0xff] }
  0x12   : > { %489 = vmatpush.msra.mxu2 %v156_v6  ;;  %329 = vmatpush.msra.mxu1 %v165_v7  ;;  %v149_v21 = vld [vmem:[%s723_s1 + $0x28] sm:$0xff]  ;;  %v148_v22 = vld [vmem:[%s723_s1 + $0x20] sm:$0xff]  ;;  %v147_v23 = vld [vmem:[%s723_s1 + $0x18] sm:$0xff] }
  0x13   : > { %257 = vmatpush.msra.mxu0 %v156_v6  ;;  %505 = vmatpush.msra.mxu3 %v165_v7  ;;  %v172_v24 = vld [vmem:[%s604_s20 + $0x18] sm:$0xff]  ;;  %v146_v25 = vld [vmem:[%s723_s1 + $0x10] sm:$0xff]  ;;  %v190_v26 = vld [vmem:[%s604_s20 + $0xa8] sm:$0xff] }
  0x14   : > { %490 = vmatpush.msra.mxu2 %v155_v8  ;;  %330 = vmatpush.msra.mxu1 %v164_v9  ;;  %v145_v27 = vld [vmem:[%s723_s1 + $0x8] sm:$0xff]  ;;  %v144_v28 = vld [vmem:[%s723_s1] sm:$0xff]  ;;  %v183_v29 = vld [vmem:[%s604_s20 + $0x70] sm:$0xff] }
  0x15   : > { %258 = vmatpush.msra.mxu0 %v155_v8  ;;  %506 = vmatpush.msra.mxu3 %v164_v9  ;;  %v169_v30 = vld [vmem:[%s604_s20] sm:$0xff]  ;;  %v174_v31 = vld [vmem:[%s604_s20 + $0x28] sm:$0xff]  ;;  %v192_v32 = vld [vmem:[%s604_s20 + $0xb8] sm:$0xff] }
  0x16   : > { %491 = vmatpush.msra.mxu2 %v154_v10  ;;  %331 = vmatpush.msra.mxu1 %v163_v11  ;;  %v185_v33 = vld [vmem:[%s604_s20 + $0x80] sm:$0xff]  ;;  %v171_v34 = vld [vmem:[%s604_s20 + $0x10] sm:$0xff]  ;;  %v176_v35 = vld [vmem:[%s604_s20 + $0x38] sm:$0xff] }
  0x17   : > { %259 = vmatpush.msra.mxu0 %v154_v10  ;;  %507 = vmatpush.msra.mxu3 %v163_v11  ;;  %v194_v36 = vld [vmem:[%s604_s20 + $0xc8] sm:$0xff]  ;;  %v187_v37 = vld [vmem:[%s604_s20 + $0x90] sm:$0xff]  ;;  %v173_v38 = vld [vmem:[%s604_s20 + $0x20] sm:$0xff] }
  0x18   : > { %492 = vmatpush.msra.mxu2 %v153_v12  ;;  %332 = vmatpush.msra.mxu1 %v162_v13  ;;  %v178_v39 = vld [vmem:[%s604_s20 + $0x48] sm:$0xff]  ;;  %v196_v40 = vld [vmem:[%s604_s20 + $0xd8] sm:$0xff]  ;;  %v189_v41 = vld [vmem:[%s604_s20 + $0xa0] sm:$0xff] }
  0x19   : > { %260 = vmatpush.msra.mxu0 %v153_v12  ;;  %508 = vmatpush.msra.mxu3 %v162_v13  ;;  %v175_v42 = vld [vmem:[%s604_s20 + $0x30] sm:$0xff]  ;;  %v180_v43 = vld [vmem:[%s604_s20 + $0x58] sm:$0xff]  ;;  %v198_v44 = vld [vmem:[%s604_s20 + $0xe8] sm:$0xff] }
  0x1a   : > { %493 = vmatpush.msra.mxu2 %v152_v14  ;;  %333 = vmatpush.msra.mxu1 %v161_v15  ;;  %v191_v45 = vld [vmem:[%s604_s20 + $0xb0] sm:$0xff]  ;;  %v177_v46 = vld [vmem:[%s604_s20 + $0x40] sm:$0xff]  ;;  %v182_v47 = vld [vmem:[%s604_s20 + $0x68] sm:$0xff] }
  0x1b   : > { %261 = vmatpush.msra.mxu0 %v152_v14  ;;  %509 = vmatpush.msra.mxu3 %v161_v15  ;;  %v200_v48 = vld [vmem:[%s604_s20 + $0xf8] sm:$0xff]  ;;  %v193_v49 = vld [vmem:[%s604_s20 + $0xc0] sm:$0xff]  ;;  %v179_v50 = vld [vmem:[%s604_s20 + $0x50] sm:$0xff] }
  0x1c   : > { %494 = vmatpush.msra.mxu2 %v151_v16  ;;  %334 = vmatpush.msra.mxu1 %v160_v17  ;;  %v184_v51 = vld [vmem:[%s604_s20 + $0x78] sm:$0xff]  ;;  %v195_v52 = vld [vmem:[%s604_s20 + $0xd0] sm:$0xff]  ;;  %v181_v53 = vld [vmem:[%s604_s20 + $0x60] sm:$0xff] }
  0x1d   : > { %466 = vmatmul.msk.f32.vlgmr.msra.gmra.mxu1 %vm201_vm1, %v170_v18  ;;  %262 = vmatpush.msra.mxu0 %v151_v16  ;;  %v186_v54 = vld [vmem:[%s604_s20 + $0x88] sm:$0xff]  ;;  %v197_v55 = vld [vmem:[%s604_s20 + $0xe0] sm:$0xff]  ;;  %v199_v56 = vld [vmem:[%s604_s20 + $0xf0] sm:$0xff] }
  0x1e   : > { %495 = vmatpush.msra.mxu2 %v150_v19  ;;  %510 = vmatpush.msra.mxu3 %v160_v17 }
  0x1f   : > { %263 = vmatpush.msra.mxu0 %v150_v19  ;;  %475 = vmatmul.msk.f32.vlgmr.msra.gmra.mxu3 %vm201_vm1, %v188_v20 }
  0x20   : > { %496 = vmatpush.msra.mxu2 %v149_v21 }
  0x21   : > { %264 = vmatpush.msra.mxu0 %v149_v21 }
  0x22   : > { %497 = vmatpush.msra.mxu2 %v148_v22 }
  0x23   : > { %265 = vmatpush.msra.mxu0 %v148_v22 }
  0x24   : > { %498 = vmatpush.msra.mxu2 %v147_v23 }
  0x25   : > { %467 = vmatmul.msk.f32.gmra.mxu1 %vm201_vm1, %v172_v24  ;;  %266 = vmatpush.msra.mxu0 %v147_v23 }
  0x26   : > { %499 = vmatpush.msra.mxu2 %v146_v25 }
  0x27   : > { %267 = vmatpush.msra.mxu0 %v146_v25  ;;  %476 = vmatmul.msk.f32.gmra.mxu3 %vm201_vm1, %v190_v26 }
  0x28   : > { %500 = vmatpush.msra.mxu2 %v145_v27 }
  0x29   : > { %268 = vmatpush.msra.mxu0 %v145_v27 }
  0x2a   : > { %501 = vmatpush.msra.mxu2 %v144_v28 }
  0x2b   : > { %291 = vmatmul.f32.vlgmr.msra.gmra.mxu2 %v183_v29  ;;  %269 = vmatpush.msra.mxu0 %v144_v28 }
  0x2c   : > { %270 = vmatmul.f32.vlgmr.msra.gmra.mxu0 %v169_v30 }
  0x2d   : > { %468 = vmatmul.msk.f32.gmra.mxu1 %vm201_vm1, %v174_v31 }
  0x2f   : > { %477 = vmatmul.msk.f32.gmra.mxu3 %vm201_vm1, %v192_v32 }
  0x33   : > { %294 = vmatmul.f32.gmra.mxu2 %v185_v33 }
  0x34   : > { %273 = vmatmul.f32.gmra.mxu0 %v171_v34 }
  0x35   : > { %469 = vmatmul.msk.f32.gmra.mxu1 %vm201_vm1, %v176_v35 }
  0x37   : > { %478 = vmatmul.msk.f32.gmra.mxu3 %vm201_vm1, %v194_v36 }
  0x3b   : > { %297 = vmatmul.f32.gmra.mxu2 %v187_v37 }
  0x3c   : > { %276 = vmatmul.f32.gmra.mxu0 %v173_v38 }
  0x3d   : > { %470 = vmatmul.msk.f32.gmra.mxu1 %vm201_vm1, %v178_v39 }
  0x3f   : > { %479 = vmatmul.msk.f32.gmra.mxu3 %vm201_vm1, %v196_v40 }
  0x43   : > { %300 = vmatmul.f32.gmra.mxu2 %v189_v41 }
  0x44   : > { %279 = vmatmul.f32.gmra.mxu0 %v175_v42 }
  0x45   : > { %471 = vmatmul.msk.f32.gmra.mxu1 %vm201_vm1, %v180_v43 }
  0x47   : > { %480 = vmatmul.msk.f32.gmra.mxu3 %vm201_vm1, %v198_v44 }
  0x4b   : > { %303 = vmatmul.f32.gmra.mxu2 %v191_v45 }
  0x4c   : > { %282 = vmatmul.f32.gmra.mxu0 %v177_v46 }
  0x4d   : > { %472 = vmatmul.msk.f32.gmra.mxu1 %vm201_vm1, %v182_v47 }
  0x4f   : > { %481 = vmatmul.msk.f32.gmra.mxu3 %vm201_vm1, %v200_v48 }
  0x53   : > { %306 = vmatmul.f32.gmra.mxu2 %v193_v49 }
  0x54   : > { %285 = vmatmul.f32.gmra.mxu0 %v179_v50 }
  0x55   : > { %473 = vmatmul.msk.f32.gmra.mxu1 %vm201_vm1, %v184_v51 }
  0x5b   : > { %309 = vmatmul.f32.gmra.mxu2 %v195_v52 }
  0x5c   : > { %288 = vmatmul.f32.gmra.mxu0 %v181_v53 }
  0x5d   : > { %474 = vmatmul.msk.f32.gmra.mxu1 %vm201_vm1, %v186_v54 }
  0x63   : > { %312 = vmatmul.f32.gmra.mxu2 %v197_v55 }
  0x6b   : > { %315 = vmatmul.f32.gmra.mxu2 %v199_v56 }
  0x9a   : > { %v336_v57 = vpop.f32.mrf.mxu1 }
  0xa2   : > { %v339_v58 = vpop.f32.mrf.mxu1  ;;  %v363_v63 = vpop.f32.mrf.mxu3 }
  0xa9   : > { %v271_v59 = vpop.f32.mrf.mxu0 }
  0xaa   : > { %v342_v60 = vpop.f32.mrf.mxu1  ;;  %v337_v61 = vadd.f32 %v336_v57, %v271_v59  ;;  %v366_v7 = vpop.f32.mrf.mxu3 }
  0xac   : > { %385 = vst.msk [vmem:[%s685_s16] sm:$0xff] %vm384_vm2, %v337_v61 }
  0xae   : > { %v292_v62 = vpop.f32.mrf.mxu2 }
  0xb1   : > { %v274_v0 = vpop.f32.mrf.mxu0 }
  0xb2   : > { %v345_v1 = vpop.f32.mrf.mxu1  ;;  %v340_v2 = vadd.f32 %v339_v58, %v274_v0  ;;  %v369_v13 = vpop.f32.mrf.mxu3 }
  0xb4   : > { %386 = vst.msk [vmem:[%s685_s16 + $0x8] sm:$0xff] %vm384_vm2, %v340_v2 }
  0xb6   : > { %v295_v3 = vpop.f32.mrf.mxu2 }
  0xb9   : > { %v277_v4 = vpop.f32.mrf.mxu0 }
  0xba   : > { %v348_v5 = vpop.f32.mrf.mxu1  ;;  %v343_v6 = vadd.f32 %v342_v60, %v277_v4  ;;  %v372_v20 = vpop.f32.mrf.mxu3 }
  0xbc   : > { %387 = vst.msk [vmem:[%s685_s16 + $0x10] sm:$0xff] %vm384_vm2, %v343_v6 }
  0xbe   : > { %v298_v8 = vpop.f32.mrf.mxu2 }
  0xbf   : > { %v364_v9 = vadd.f32 %v363_v63, %v298_v8 }
  0xc1   : > { %394 = vst.msk [vmem:[%s685_s16 + $0x48] sm:$0xff] %vm384_vm2, %v364_v9  ;;  %v280_v10 = vpop.f32.mrf.mxu0 }
  0xc2   : > { %v351_v11 = vpop.f32.mrf.mxu1  ;;  %v346_v12 = vadd.f32 %v345_v1, %v280_v10  ;;  %v375_v28 = vpop.f32.mrf.mxu3 }
  0xc4   : > { %388 = vst.msk [vmem:[%s685_s16 + $0x18] sm:$0xff] %vm384_vm2, %v346_v12 }
  0xc6   : > { %v301_v14 = vpop.f32.mrf.mxu2 }
  0xc7   : > { %v367_v15 = vadd.f32 %v366_v7, %v301_v14 }
  0xc9   : > { %395 = vst.msk [vmem:[%s685_s16 + $0x50] sm:$0xff] %vm384_vm2, %v367_v15  ;;  %v283_v16 = vpop.f32.mrf.mxu0 }
  0xca   : > { %v354_v17 = vpop.f32.mrf.mxu1  ;;  %v349_v18 = vadd.f32 %v348_v5, %v283_v16  ;;  %v378_v35 = vpop.f32.mrf.mxu3 }
  0xcc   : > { %389 = vst.msk [vmem:[%s685_s16 + $0x20] sm:$0xff] %vm384_vm2, %v349_v18 }
  0xce   : > { %v304_v19 = vpop.f32.mrf.mxu2 }
  0xcf   : > { %v370_v21 = vadd.f32 %v369_v13, %v304_v19 }
  0xd1   : > { %396 = vst.msk [vmem:[%s685_s16 + $0x58] sm:$0xff] %vm384_vm2, %v370_v21  ;;  %v286_v22 = vpop.f32.mrf.mxu0 }
  0xd2   : > { %v357_v23 = vpop.f32.mrf.mxu1  ;;  %v352_v24 = vadd.f32 %v351_v11, %v286_v22  ;;  %v381_v38 = vpop.f32.mrf.mxu3 }
  0xd3   : > { %v358_v25 = vadd.f32 %v357_v23, %v292_v62 }
  0xd4   : > { %390 = vst.msk [vmem:[%s685_s16 + $0x28] sm:$0xff] %vm384_vm2, %v352_v24 }
  0xd5   : > { %392 = vst.msk [vmem:[%s685_s16 + $0x38] sm:$0xff] %vm384_vm2, %v358_v25 }
  0xd6   : > { %v307_v26 = vpop.f32.mrf.mxu2 }
  0xd7   : > { %v373_v27 = vadd.f32 %v372_v20, %v307_v26 }
  0xd9   : > { %397 = vst.msk [vmem:[%s685_s16 + $0x60] sm:$0xff] %vm384_vm2, %v373_v27  ;;  %v289_v29 = vpop.f32.mrf.mxu0 }
  0xda   : > { %v360_v30 = vpop.f32.mrf.mxu1  ;;  %v355_v31 = vadd.f32 %v354_v17, %v289_v29 }
  0xdb   : > { %v361_v32 = vadd.f32 %v360_v30, %v295_v3 }
  0xdc   : > { %391 = vst.msk [vmem:[%s685_s16 + $0x30] sm:$0xff] %vm384_vm2, %v355_v31 }
  0xdd   : > { %393 = vst.msk [vmem:[%s685_s16 + $0x40] sm:$0xff] %vm384_vm2, %v361_v32 }
  0xde   : > { %v310_v33 = vpop.f32.mrf.mxu2 }
  0xdf   : > { %v376_v34 = vadd.f32 %v375_v28, %v310_v33 }
  0xe1   : > { %398 = vst.msk [vmem:[%s685_s16 + $0x68] sm:$0xff] %vm384_vm2, %v376_v34 }
  0xe6   : > { %v313_v36 = vpop.f32.mrf.mxu2 }
  0xe7   : > { %v379_v37 = vadd.f32 %v378_v35, %v313_v36 }
  0xe9   : > { %399 = vst.msk [vmem:[%s685_s16 + $0x70] sm:$0xff] %vm384_vm2, %v379_v37 }
  0xee   : > { %v316_v39 = vpop.f32.mrf.mxu2 }
  0xef   : > { %v382_v40 = vadd.f32 %v381_v38, %v316_v39 }
  0xf1   : > { %400 = vst.msk [vmem:[%s685_s16 + $0x78] sm:$0xff] %vm384_vm2, %v382_v40 }
  0xf2 PF: > { %s12_s9 = sadd.s32 1, %s525_s9  }
  0xf3   : > { %p9_p4 = scmp.ge.s32.totalorder %s12_s9, 4  }
  0xf5   :  { %11 = sbr.rel (!%p9_p4) target bundleno = 1 (0x1), region = 58 }

</bundles_post_ra>
